<compile_context>
chip_gen: v5e
topology: v5e:2x2
jax: 0.10.0
libtpu: 0.0.40
codegen_flags: <defaults>
</compile_context>

<pallas_src>
import functools

import jax
import jax.numpy as jnp
from jax.experimental import pallas as pl
from jax.experimental.pallas import tpu as pltpu

LANE = 128                            # TPU lane width -> last dim of the slab
DEFAULT_TILE_BYTES = 4 * 1024 * 1024  # per-input tile (8192 rows f32, 16384 bf16)


def _charbonnier_kernel(x_ref, y_ref, out_ref, *, eps, alpha, rows, blk_rows,
                        needs_mask, sub_in_input_dtype):
    i = pl.program_id(0)

    if sub_in_input_dtype:
        # bf16/fp16: subtract in the packed input dtype (native 16-bit VALU on
        # v6e/v7x), single upcast afterwards.  On v5e Mosaic upcasts internally.
        d = (x_ref[...] - y_ref[...]).astype(jnp.float32)
    else:
        d = x_ref[...].astype(jnp.float32) - y_ref[...].astype(jnp.float32)

    sq = d * d + jnp.float32(eps)
    if alpha == 1.0:
        val = sq                                      # L2 mode: no EUP work
    else:
        # (d^2 + eps) ** alpha via exp/log on the EUP (argument strictly > 0).
        val = jnp.exp(jnp.float32(alpha) * jnp.log(sq))

    def _partial(v):
        # Sublane-only reduce -> lane-wide per-block partial sum.
        return jnp.sum(v, axis=0, keepdims=True).reshape(1, 1, LANE)

    if needs_mask:
        last = pl.num_programs(0) - 1

        @pl.when(i < last)
        def _():
            out_ref[...] = _partial(val)

        @pl.when(i == last)
        def _():
            # Only the clipped last block holds rows past the logical extent;
            # row-only mask, NaN/Inf from stale buffer rows is selected out.
            row_ids = jax.lax.broadcasted_iota(jnp.int32, val.shape, 0)
            mask = (i * blk_rows + row_ids) < rows
            out_ref[...] = _partial(jnp.where(mask, val, jnp.float32(0.0)))
    else:
        out_ref[...] = _partial(val)


def charbonnier_loss(x, y, eps=1e-6, alpha=0.45,
                     max_tile_bytes=DEFAULT_TILE_BYTES):
    """Pallas TPU CharbonnierLoss.forward for real-valued inputs."""
    # TODO(synk): complex inputs (torch.conj path) not supported; real-valued only.
    assert x.shape == y.shape
    total = int(x.size)
    assert total > 0

    xf = x.reshape(-1)
    yf = y.reshape(-1)

    pad = (-total) % LANE
    if pad:
        # Rare odd-size fallback.  Padded elements are exact zeros, so each
        # contributes eps**alpha to the sum; subtracted analytically below —
        # no in-kernel masking needed for the pad.
        # TODO(synk): jnp.pad copies the whole tensor; only hit on odd sizes.
        xf = jnp.pad(xf, (0, pad))
        yf = jnp.pad(yf, (0, pad))

    rows = (total + pad) // LANE
    itemsize = jnp.dtype(x.dtype).itemsize
    blk_rows_max = max(8, (max_tile_bytes // (LANE * itemsize)) // 8 * 8)
    blk_rows = rows if rows <= blk_rows_max else blk_rows_max
    num_blocks = pl.cdiv(rows, blk_rows)
    needs_mask = (rows % blk_rows) != 0   # only the clipped last block

    x2 = xf.reshape(rows, LANE)
    y2 = yf.reshape(rows, LANE)

    narrow = (jnp.dtype(jnp.bfloat16), jnp.dtype(jnp.float16))
    sub_in_input_dtype = (jnp.dtype(x.dtype) == jnp.dtype(y.dtype)
                          and jnp.dtype(x.dtype) in narrow)

    kernel = functools.partial(
        _charbonnier_kernel,
        eps=float(eps), alpha=float(alpha), rows=rows, blk_rows=blk_rows,
        needs_mask=needs_mask, sub_in_input_dtype=sub_in_input_dtype)

    partials = pl.pallas_call(
        kernel,
        out_shape=jax.ShapeDtypeStruct((num_blocks, 1, LANE), jnp.float32),
        grid_spec=pltpu.PrefetchScalarGridSpec(
            num_scalar_prefetch=0,
            grid=(num_blocks,),
            in_specs=[
                pl.BlockSpec((blk_rows, LANE), lambda i: (i, 0)),
                pl.BlockSpec((blk_rows, LANE), lambda i: (i, 0)),
            ],
            out_specs=pl.BlockSpec((1, 1, LANE), lambda i: (i, 0, 0)),
        ),
        compiler_params=pltpu.CompilerParams(
            dimension_semantics=("parallel",),   # lets v7x split across 2 TCs
            vmem_limit_bytes=32 * 1024 * 1024,
        ),
    )(x2, y2)

    total_sum = jnp.sum(partials)
    if pad:
        total_sum = total_sum - jnp.float32(pad) * jnp.float32(
            float(eps) ** float(alpha))
    return total_sum / jnp.float32(total)


def charbonnier_loss_ref(x, y, eps=1e-6, alpha=0.45):
    d = x.astype(jnp.float32) - y.astype(jnp.float32)
    return jnp.mean((d * d + eps) ** alpha)


# TODO(synk): the remaining CriterionKGIN terms (HDRLoss on complex k-space,
# PSNR, torch.nn.L1Loss, and the loss-dict weighting/orchestration) are not
# translated here; this kernel covers the CharbonnierLoss / 'L2' photometric core.

if __name__ == "__main__":
    key = jax.random.PRNGKey(0)

    # 1) NCHW conv-style inputs (aligned, single-block path).
    kx, ky = jax.random.split(key)
    x = jax.random.normal(kx, (2, 4, 16, 16), dtype=jnp.float32)
    y = jax.random.normal(ky, (2, 4, 16, 16), dtype=jnp.float32)
    out = jax.block_until_ready(charbonnier_loss(x, y))
    ref = charbonnier_loss_ref(x, y)
    assert jnp.allclose(out, ref, rtol=1e-4, atol=1e-6), (out, ref)

    # 1b) 'L2' PhotometricLoss mode (Charbonnier with alpha=1, no EUP path).
    out_l2 = jax.block_until_ready(charbonnier_loss(x, y, eps=1e-6, alpha=1.0))
    ref_l2 = charbonnier_loss_ref(x, y, eps=1e-6, alpha=1.0)
    assert jnp.allclose(out_l2, ref_l2, rtol=1e-4, atol=1e-6), (out_l2, ref_l2)

    # 2) Unaligned element count -> wrapper-side pad correction, mask-free kernel.
    kx2, ky2 = jax.random.split(jax.random.fold_in(key, 1))
    x2 = jax.random.normal(kx2, (2, 3, 5, 7), dtype=jnp.float32)
    y2 = jax.random.normal(ky2, (2, 3, 5, 7), dtype=jnp.float32)
    out2 = jax.block_until_ready(charbonnier_loss(x2, y2))
    ref2 = charbonnier_loss_ref(x2, y2)
    assert jnp.allclose(out2, ref2, rtol=1e-4, atol=1e-6), (out2, ref2)

    # 3) bf16 inputs kept narrow in HBM; in-dtype subtract, single block.
    kx3, ky3 = jax.random.split(jax.random.fold_in(key, 2))
    x3 = jax.random.normal(kx3, (1, 8, 240, 320), dtype=jnp.bfloat16)
    y3 = jax.random.normal(ky3, (1, 8, 240, 320), dtype=jnp.bfloat16)
    out3 = jax.block_until_ready(charbonnier_loss(x3, y3))
    ref3 = charbonnier_loss_ref(x3, y3)
    assert jnp.allclose(out3, ref3, rtol=1e-3, atol=1e-5), (out3, ref3)

    # 4) Force a multi-block grid with a clipped (pl.when-masked) last block, bf16.
    out4 = jax.block_until_ready(
        charbonnier_loss(x3, y3, max_tile_bytes=256 * 1024))
    assert jnp.allclose(out4, ref3, rtol=1e-3, atol=1e-5), (out4, ref3)

    # 5) f32 multi-block grid with a clipped last block (rows=300, blk=128).
    kx5, ky5 = jax.random.split(jax.random.fold_in(key, 3))
    x5 = jax.random.normal(kx5, (2, 4, 30, 160), dtype=jnp.float32)
    y5 = jax.random.normal(ky5, (2, 4, 30, 160), dtype=jnp.float32)
    out5 = jax.block_until_ready(
        charbonnier_loss(x5, y5, max_tile_bytes=64 * 1024))
    ref5 = charbonnier_loss_ref(x5, y5)
    assert jnp.allclose(out5, ref5, rtol=1e-4, atol=1e-6), (out5, ref5)

    print("KERNEL_OK")
</pallas_src>

<mosaic_0001>
module attributes {stable_mosaic.version = 11 : i64} {
  func.func @_charbonnier_kernel(%arg0: i32, %arg1: memref<16x128xf32, #tpu.memory_space<vmem>>, %arg2: memref<16x128xf32, #tpu.memory_space<vmem>>, %arg3: memref<1x1x128xf32, #tpu.memory_space<vmem>>) attributes {dimension_semantics = [#tpu.dimension_semantics<parallel>], iteration_bounds = array<i64: 1>, scalar_prefetch = 0 : i64, scratch_operands = 0 : i64, tpu.core_type = #tpu.core_type<tc>, window_params = [{transform_indices = @transform_0, window_bounds = array<i64: 16, 128>}, {transform_indices = @transform_1, window_bounds = array<i64: 16, 128>}, {transform_indices = @transform_2, window_bounds = array<i64: 1, 1, 128>}]} {
    %c0 = arith.constant 0 : index
    %c0_0 = arith.constant 0 : index
    %0 = vector.load %arg1[%c0, %c0_0] : memref<16x128xf32, #tpu.memory_space<vmem>>, vector<16x128xf32>
    %c0_1 = arith.constant 0 : index
    %c0_2 = arith.constant 0 : index
    %1 = vector.load %arg2[%c0_1, %c0_2] : memref<16x128xf32, #tpu.memory_space<vmem>>, vector<16x128xf32>
    %2 = arith.subf %0, %1 : vector<16x128xf32>
    %3 = arith.mulf %2, %2 : vector<16x128xf32>
    %cst = arith.constant 9.99999997E-7 : f32
    %4 = vector.broadcast %cst : f32 to vector<16x128xf32>
    %5 = arith.addf %3, %4 : vector<16x128xf32>
    %6 = math.log %5 : vector<16x128xf32>
    %cst_3 = arith.constant 4.500000e-01 : f32
    %7 = vector.broadcast %cst_3 : f32 to vector<16x128xf32>
    %8 = arith.mulf %7, %6 : vector<16x128xf32>
    %9 = math.exp %8 : vector<16x128xf32>
    %cst_4 = arith.constant dense<0.000000e+00> : vector<128xf32>
    %10 = vector.multi_reduction <add>, %9, %cst_4 [0] : vector<16x128xf32> to vector<128xf32>
    %11 = vector.shape_cast %10 : vector<128xf32> to vector<1x128xf32>
    %12 = vector.shape_cast %11 : vector<1x128xf32> to vector<1x1x128xf32>
    %c0_5 = arith.constant 0 : index
    %c0_6 = arith.constant 0 : index
    %c0_7 = arith.constant 0 : index
    %13 = vector.load %arg3[%c0_5, %c0_6, %c0_7] : memref<1x1x128xf32, #tpu.memory_space<vmem>>, vector<1x1x128xf32>
    tpu.vector_store %arg3[%c0_5, %c0_6, %c0_7], %12 {strides = array<i32>} : memref<1x1x128xf32, #tpu.memory_space<vmem>>, vector<1x1x128xf32>,
    return
  }
  func.func @transform_0(%arg0: i32) -> (i32, i32) {
    %c0_i32 = arith.constant 0 : i32
    %c0_i32_0 = arith.constant 0 : i32
    return %arg0, %c0_i32 : i32, i32
  }
  func.func @transform_1(%arg0: i32) -> (i32, i32) {
    %c0_i32 = arith.constant 0 : i32
    %c0_i32_0 = arith.constant 0 : i32
    return %arg0, %c0_i32 : i32, i32
  }
  func.func @transform_2(%arg0: i32) -> (i32, i32, i32) {
    %c0_i32 = arith.constant 0 : i32
    %c0_i32_0 = arith.constant 0 : i32
    %c0_i32_1 = arith.constant 0 : i32
    return %arg0, %c0_i32, %c0_i32_0 : i32, i32, i32
  }
}

</mosaic_0001>

<bundles_post_ra>
// kernel: tpu_custom_call.1
= control target key start
LH: loop header
LB: loop body
LE: loop exit
PB: predicated region body
PF: predicated region fallthrough
CT: control target
= control target key end

     0   :  { %7 = vsyncpa [#allocation3], 0  ;;  %s210_s0 = inlined_call_operand.hbm [shape: f32[16,128], index: 0, kind: input, shape index: {}]   ;;  %s211_s1 = inlined_call_operand.hbm [shape: f32[16,128], index: 1, kind: input, shape index: {}]   ;;  %s212_s2 = inlined_call_operand.hbm [shape: f32[1,1,128], index: 2, kind: output, shape index: {}]  }
   0x1   :  { %8 = vsyncpa [#allocation6], 0 }
   0x2   :  { %9 = vsyncpa [#allocation4], 0  ;;  %s14_s11 = sshll.u32 %s210_s0, 4  ;;  %s181_s12 = smov [#allocation2]   ;;  %s15_s11 = int_to_ptr.hbm [resolvable:$true] %s14_s11 }
   0x3   :  { %s16_s13 = sshll.u32 %s181_s12, 4  ;;  %s27_s16 = sshll.u32 %s211_s1, 4  ;;  %s17_s13 = int_to_ptr.vmem [resolvable:$true] %s16_s13  ;;  %s28_s16 = int_to_ptr.hbm [resolvable:$true] %s27_s16 }
   0x4   :  { %s182_s17 = smov 128   ;;  %s183_s18 = smov 8  }
   0x5   :  { %22 = dma.hbm_to_vmem [thread:$0]  %s15_s11, 256, %s17_s13, [#allocation3], %s182_s17, %s182_s17, %s183_s18  }
   0x6   :  { %s184_s19 = smov [#allocation5]  }
   0x7   :  { %s29_s20 = sshll.u32 %s184_s19, 4  ;;  %s30_s20 = int_to_ptr.vmem [resolvable:$true] %s29_s20 }
   0x8   :  { %35 = dma.hbm_to_vmem [thread:$0]  %s28_s16, 256, %s30_s20, [#allocation6], %s182_s17, %s182_s17, %s183_s18  }
   0x9   :  { %175 = dma.done.wait [#allocation3], 256  }
   0xa   :  { %176 = vsyncadd [#allocation3], 4294967040 }
   0xb   :  { %177 = dma.done.wait [#allocation6], 256  }
   0xc   :  { %178 = vsyncadd [#allocation6], 4294967040  ;;  %v44_v0 = vld [vmem:[#allocation2] sm:$0xff]  ;;  %v45_v1 = vld [vmem:[#allocation2 + $0x8] sm:$0xff]  ;;  %s185_s0 = smov [#allocation7]   ;;  %s79_s23 = sshll.u32 %s212_s2, 4  ;;  %s80_s23 = int_to_ptr.hbm [resolvable:$true] %s79_s23 }
   0xd   :  { %v46_v2 = vld [vmem:[#allocation5] sm:$0xff]  ;;  %v47_v3 = vld [vmem:[#allocation5 + $0x8] sm:$0xff]  ;;  %s77_s1 = sshll.u32 %s185_s0, 4  ;;  %s78_s1 = int_to_ptr.vmem [resolvable:$true] %s77_s1 }
   0xe   :  { %v48_v4 = vsub.f32 %v44_v0, %v46_v2  ;;  %v49_v5 = vsub.f32 %v45_v1, %v47_v3 }
  0x10   :  { %v50_v6 = vmul.f32 %v48_v4, %v48_v4  ;;  %v51_v7 = vmul.f32 %v49_v5, %v49_v5 }
  0x12   :  { %v52_v8 = vadd.f32 1e-06, %v50_v6  ;;  %v53_v9 = vadd.f32 1e-06, %v51_v7 }
  0x14   :  { %95 = vlog2.f32 %v52_v8 }
  0x15   :  { %97 = vlog2.f32 %v53_v9 }
  0x1a   :  { %v96_v10 = vpop.eup %95 }
  0x1b   :  { %v98_v11 = vpop.eup %97  ;;  %v55_v12 = vmul.f32 0.6931472, %v96_v10 }
  0x1c   :  { %v57_v13 = vmul.f32 0.6931472, %v98_v11 }
  0x1d   :  { %v58_v14 = vmul.f32 0.45, %v55_v12 }
  0x1e   :  { %v59_v15 = vmul.f32 0.45, %v57_v13 }
  0x1f   :  { %v60_v16 = vmul.f32 1.442695, %v58_v14 }
  0x20   :  { %v62_v17 = vmul.f32 1.442695, %v59_v15 }
  0x21   :  { %99 = vpow2.f32 %v60_v16 }
  0x22   :  { %101 = vpow2.f32 %v62_v17 }
  0x27   :  { %v100_v18 = vpop.eup %99 }
  0x28   :  { %v102_v19 = vpop.eup %101 }
  0x29   :  { %v64_v20 = vadd.f32 %v102_v19, %v100_v18 }
  0x2b   :  { %v65_v21 = vrot.slane %v64_v20, 4 }
  0x2d   :  { %v66_v22 = vadd.f32 %v65_v21, %v64_v20 }
  0x2f   :  { %v67_v23 = vrot.slane %v66_v22, 2 }
  0x31   :  { %v68_v24 = vadd.f32 %v67_v23, %v66_v22 }
  0x33   :  { %v69_v25 = vrot.slane %v68_v24, 1 }
  0x35   :  { %v70_v26 = vadd.f32 %v69_v25, %v68_v24 }
  0x37   :  { %71 = vst [vmem:[#allocation7] sm:$0x1] %v70_v26 }
  0x38   :  { %82 = dma.vmem_to_hbm [thread:$0]  %s78_s1, 16, %s80_s23, [#allocation4]  }
  0x39   :  { %179 = dma.done.wait [#allocation4], 16  }
  0x3a   :  { %180 = vsyncadd [#allocation4], 4294967280 }
  0x3b   :  { %87 = vsyncpa [#allocation3], 1 }
  0x3c   :  { %88 = vsyncpa [#allocation6], 1 }
  0x3d   :  { %89 = vsyncpa [#allocation4], 1 }

</bundles_post_ra>
